<compile_context>
chip_gen: v7x
topology: tpu7x:2x2x1
jax: 0.10.0
libtpu: 0.0.40
codegen_flags: <defaults>
</compile_context>

<pallas_src>
import functools

import jax
import jax.numpy as jnp
from jax.experimental import pallas as pl
from jax.experimental.pallas import tpu as pltpu

VOCAB = 30522        # mlm_head output features
NSP_CLASSES = 2      # nsp_head output features


def _linear_kernel(x_ref, w_ref, b_ref, o_ref):
    # x: (TM, H) bf16, w: (H, TN) bf16, b: (1, TN) f32 -> o: (TM, TN) out_dtype
    acc = jnp.dot(x_ref[...], w_ref[...], preferred_element_type=jnp.float32)
    o_ref[...] = (acc + b_ref[...].astype(jnp.float32)).astype(o_ref.dtype)


def pallas_linear(x2d, w, b, *, tm=4096, tn=1024, out_dtype=jnp.bfloat16):
    """Row/vocab tiled linear: x2d (M, H) @ w (H, N) + b (N,) -> (M, N).

    * bf16 operands (single wrapper-side cast), f32 MXU accumulation.
    * 2-D grid (row tiles x vocab tiles), both axes "parallel" (megacore /
      dual-TC friendly); ragged edge blocks are clipped by Pallas, so there is
      no in-jit padding of weights/bias and no post-kernel slice copy.
    """
    M, H = x2d.shape
    Hw, N = w.shape
    assert H == Hw and b.shape == (N,)

    # Cast activations to the weight dtype ONCE here (not per vocab tile in the
    # kernel): bf16 MXU path on every chip generation, half the activation DMA,
    # half the x-tile VMEM footprint.
    if x2d.dtype != w.dtype:
        x2d = x2d.astype(w.dtype)

    bpe = lambda d: jnp.dtype(d).itemsize
    x_b, w_b, b_b, o_b = bpe(x2d.dtype), bpe(w.dtype), bpe(b.dtype), bpe(out_dtype)

    # Physical VMEM: 128 MiB on v5e/v6e, 64 MiB on v7x.  Keep 25% headroom for
    # compiler-internal scratch / semaphores.
    try:
        vmem_phys = int(pltpu.get_tpu_info().vmem_capacity_bytes)
    except Exception:
        vmem_phys = 64 * 1024 * 1024          # conservative (v7x)
    vmem_cap = vmem_phys * 3 // 4

    tm = M if M <= tm else tm                 # full-M block is always legal
    tn = N if N <= tn else tn

    def working_set(tm_, tn_):                # double-buffered per-step bytes
        return 2 * (tm_ * H * x_b + H * tn_ * w_b + tn_ * b_b + tm_ * tn_ * o_b)

    # Shrink row tile (then vocab tile) until the working set fits under cap.
    while tm != M and tm > 512 and working_set(tm, tn) > vmem_cap:
        tm //= 2                              # 4096 -> 2048 -> 1024 -> 512
    while tn != N and tn > 512 and working_set(tm, tn) > vmem_cap:
        tn //= 2

    sub = 16 if x_b == 2 else 8               # bf16 min sublane tile is 16
    assert tm == M or tm % sub == 0
    assert tn == N or tn % 128 == 0

    grid = (pl.cdiv(M, tm), pl.cdiv(N, tn))
    vmem_limit = int(min(vmem_cap,
                         max(32 * 1024 * 1024, working_set(tm, tn) * 3 // 2)))

    # Advisory cost hint: weight is re-read once per row tile.
    cost = pl.CostEstimate(
        flops=2 * M * H * N,
        transcendentals=0,
        bytes_accessed=int(M * H * x_b + pl.cdiv(M, tm) * H * N * w_b
                           + N * b_b + M * N * o_b),
    )

    # TODO(synk): on v5e, padding w/b once at init to a multiple of tn (30720)
    # removes the masked stores on the ragged tail tile; only worth it if the
    # padded logits can be consumed without a slice copy.
    return pl.pallas_call(
        _linear_kernel,
        out_shape=jax.ShapeDtypeStruct((M, N), out_dtype),
        grid_spec=pltpu.PrefetchScalarGridSpec(
            num_scalar_prefetch=0,
            grid=grid,
            in_specs=[
                pl.BlockSpec((tm, H), lambda i, j: (i, 0)),   # activation rows
                pl.BlockSpec((H, tn), lambda i, j: (0, j)),   # weight columns
                pl.BlockSpec((1, tn), lambda i, j: (0, j)),   # bias tile
            ],
            out_specs=pl.BlockSpec((tm, tn), lambda i, j: (i, j)),
        ),
        compiler_params=pltpu.CompilerParams(
            dimension_semantics=("parallel", "parallel"),
            vmem_limit_bytes=vmem_limit,
        ),
        cost_estimate=cost,
    )(x2d, w, b.reshape(1, N))


def init_params(key, hidden_size, mlm_weight_dtype=jnp.bfloat16):
    """PyTorch nn.Linear-style init (U[-1/sqrt(H), 1/sqrt(H)]); weights stored (H, out)."""
    k1, k2, k3, k4 = jax.random.split(key, 4)
    bound = 1.0 / (hidden_size ** 0.5)
    w_mlm = jax.random.uniform(k1, (hidden_size, VOCAB), jnp.float32, -bound, bound)
    b_mlm = jax.random.uniform(k2, (VOCAB,), jnp.float32, -bound, bound)
    w_nsp = jax.random.uniform(k3, (hidden_size, NSP_CLASSES), jnp.float32, -bound, bound)
    b_nsp = jax.random.uniform(k4, (NSP_CLASSES,), jnp.float32, -bound, bound)
    return dict(w_mlm=w_mlm.astype(mlm_weight_dtype), b_mlm=b_mlm,
                w_nsp=w_nsp, b_nsp=b_nsp)


@functools.partial(jax.jit, static_argnames=("logits_dtype",))
def self_supervised_task(embeddings, params, logits_dtype=jnp.bfloat16):
    """embeddings: (B, S, H) f32 -> (mlm: (B, S, 30522), nsp: (B, 2) f32)."""
    B, S, H = embeddings.shape

    # ---- MLM head: Linear(H, 30522) on every token (hot path, Pallas) ----
    x2d = embeddings.reshape(B * S, H)
    mlm2d = pallas_linear(x2d, params["w_mlm"], params["b_mlm"],
                          out_dtype=logits_dtype)
    mlm = mlm2d.reshape(B, S, VOCAB)
    # TODO(synk): for the training loss path, fuse log-softmax / cross-entropy
    # over the vocab-tile axis (make j "arbitrary" + last, online max/sum in
    # VMEM scratch) so the (B, S, 30522) logits never hit HBM at all.  Not done
    # here because the module's forward must return the raw logits.

    # ---- NSP head: (B, H) @ (H, 2) on the [CLS] token -- plain XLA ----
    nsp = (jnp.dot(embeddings[:, 0, :], params["w_nsp"],
                   precision=jax.lax.Precision.HIGHEST)
           + params["b_nsp"])
    return mlm, nsp


if __name__ == "__main__":
    B, S, H = 2, 8, 32
    key = jax.random.PRNGKey(0)
    k_emb, k_param = jax.random.split(key)
    embeddings = jax.random.normal(k_emb, (B, S, H), jnp.float32)
    params = init_params(k_param, H)          # bf16 MLM weight

    mlm_out, nsp_out = self_supervised_task(embeddings, params)
    jax.block_until_ready((mlm_out, nsp_out))

    assert mlm_out.shape == (B, S, VOCAB) and nsp_out.shape == (B, NSP_CLASSES)
    assert mlm_out.dtype == jnp.bfloat16 and nsp_out.dtype == jnp.float32

    # Reference with the same bf16-rounded operands the kernel uses (f32 acc).
    x_bf = embeddings.astype(jnp.bfloat16).astype(jnp.float32)
    w_bf = params["w_mlm"].astype(jnp.float32)
    mlm_ref = jnp.einsum("bsh,hv->bsv", x_bf, w_bf,
                         precision=jax.lax.Precision.HIGHEST) + params["b_mlm"]

    # bf16-logits default: difference is output quantization only.
    assert jnp.allclose(mlm_out.astype(jnp.float32), mlm_ref,
                        atol=1e-2, rtol=1e-2), \
        float(jnp.max(jnp.abs(mlm_out.astype(jnp.float32) - mlm_ref)))

    # f32-logits path (PyTorch-equivalent output dtype) still available.
    mlm_f32, _ = self_supervised_task(embeddings, params,
                                      logits_dtype=jnp.float32)
    jax.block_until_ready(mlm_f32)
    assert mlm_f32.dtype == jnp.float32
    assert jnp.allclose(mlm_f32, mlm_ref, atol=1e-3, rtol=1e-3), \
        float(jnp.max(jnp.abs(mlm_f32 - mlm_ref)))

    nsp_ref = (jnp.dot(embeddings[:, 0, :], params["w_nsp"],
                       precision=jax.lax.Precision.HIGHEST) + params["b_nsp"])
    assert jnp.allclose(nsp_out, nsp_ref, atol=1e-5)

    print("KERNEL_OK")
</pallas_src>

<mosaic_0001>
module attributes {stable_mosaic.version = 11 : i64} {
  func.func @_linear_kernel(%arg0: i32, %arg1: i32, %arg2: memref<16x32xbf16, #tpu.memory_space<vmem>>, %arg3: memref<32x1024xbf16, #tpu.memory_space<vmem>>, %arg4: memref<1x1024xf32, #tpu.memory_space<vmem>>, %arg5: memref<16x1024xbf16, #tpu.memory_space<vmem>>) attributes {dimension_semantics = [#tpu.dimension_semantics<parallel>, #tpu.dimension_semantics<parallel>], iteration_bounds = array<i64: 1, 30>, scalar_prefetch = 0 : i64, scratch_operands = 0 : i64, tpu.core_type = #tpu.core_type<tc>, window_params = [{transform_indices = @transform_0, window_bounds = array<i64: 16, 32>}, {transform_indices = @transform_1, window_bounds = array<i64: 32, 1024>}, {transform_indices = @transform_2, window_bounds = array<i64: 1, 1024>}, {transform_indices = @transform_3, window_bounds = array<i64: 16, 1024>}]} {
    %c0 = arith.constant 0 : index
    %c0_0 = arith.constant 0 : index
    %0 = vector.load %arg2[%c0, %c0_0] : memref<16x32xbf16, #tpu.memory_space<vmem>>, vector<16x32xbf16>
    %c0_1 = arith.constant 0 : index
    %c0_2 = arith.constant 0 : index
    %1 = vector.load %arg3[%c0_1, %c0_2] : memref<32x1024xbf16, #tpu.memory_space<vmem>>, vector<32x1024xbf16>
    %cst = arith.constant dense<0.000000e+00> : vector<16x1024xf32>
    %2 = tpu.matmul %0, %1, %cst {dimension_numbers = #tpu.dot_dimension_numbers<[1], [0], [0], [1], [0, 0, 1, 1], [], []>} : vector<16x32xbf16>, vector<32x1024xbf16>, vector<16x1024xf32> -> vector<16x1024xf32>
    %c0_3 = arith.constant 0 : index
    %c0_4 = arith.constant 0 : index
    %3 = vector.load %arg4[%c0_3, %c0_4] : memref<1x1024xf32, #tpu.memory_space<vmem>>, vector<1x1024xf32>
    %4 = vector.broadcast %3 : vector<1x1024xf32> to vector<16x1024xf32>
    %5 = arith.addf %2, %4 : vector<16x1024xf32>
    %6 = arith.truncf %5 : vector<16x1024xf32> to vector<16x1024xbf16>
    %c0_5 = arith.constant 0 : index
    %c0_6 = arith.constant 0 : index
    %7 = vector.load %arg5[%c0_5, %c0_6] : memref<16x1024xbf16, #tpu.memory_space<vmem>>, vector<16x1024xbf16>
    tpu.vector_store %arg5[%c0_5, %c0_6], %6 {strides = array<i32>} : memref<16x1024xbf16, #tpu.memory_space<vmem>>, vector<16x1024xbf16>,
    return
  }
  func.func @transform_0(%arg0: i32, %arg1: i32) -> (i32, i32) {
    %c0_i32 = arith.constant 0 : i32
    %c0_i32_0 = arith.constant 0 : i32
    return %arg0, %c0_i32 : i32, i32
  }
  func.func @transform_1(%arg0: i32, %arg1: i32) -> (i32, i32) {
    %c0_i32 = arith.constant 0 : i32
    %c0_i32_0 = arith.constant 0 : i32
    return %c0_i32, %arg1 : i32, i32
  }
  func.func @transform_2(%arg0: i32, %arg1: i32) -> (i32, i32) {
    %c0_i32 = arith.constant 0 : i32
    %c0_i32_0 = arith.constant 0 : i32
    return %c0_i32, %arg1 : i32, i32
  }
  func.func @transform_3(%arg0: i32, %arg1: i32) -> (i32, i32) {
    %c0_i32 = arith.constant 0 : i32
    return %arg0, %arg1 : i32, i32
  }
}

</mosaic_0001>

<bundles_post_ra>
// kernel: self_supervised_task.1
= control target key start
LH: loop header
LB: loop body
LE: loop exit
PB: predicated region body
PF: predicated region fallthrough
CT: control target
= control target key end

     0   :  { %8 = vsyncpa [#allocation3], 0  ;;  %s1297_s0 = inlined_call_operand.vmem [shape: bf16[16,32], index: 0, kind: input, shape index: {}]   ;;  %s1298_s1 = inlined_call_operand.hbm [shape: bf16[32,30522], index: 1, kind: input, shape index: {}]   ;;  %s1299_s2 = inlined_call_operand.vmem [shape: f32[1,30522], index: 2, kind: input, shape index: {}]   ;;  %s1300_s3 = inlined_call_operand.hbm [shape: bf16[16,30522], index: 3, kind: output, shape index: {}]  }
   0x1   :  { %10 = vsyncpa [#allocation3 + $0x1], 0 }
   0x2   :  { %11 = vsyncpa [#allocation4], 0 }
   0x3   :  { %13 = vsyncpa [#allocation4 + $0x1], 0  ;;  %s1062_s12 = smov 0   ;;  %s1064_s13 = smov 0  }
   0x4   :  { %s1066_s14 = smov 0   ;;  %s1068_s15 = smov 0  }
   0x5   :  { %s1070_s16 = smov 0   ;;  %s1072_s17 = smov 0  }
   0x6 LB: > { %s792_s18 = sadd.s32 4294967295, %s1033_s17   ;;  %s793_s19 = sadd.s32 4294967294, %s1033_s17   ;;  %s1033_s17 = sphi %s1072_s17, %s19_s17   ;;  %s1029_s16 = sphi %s1070_s16, %s1309_s16   ;;  %s1025_s15 = sphi %s1068_s15, %s1308_s15   ;;  %s1021_s14 = sphi %s1066_s14, %s1307_s14   ;;  %s1017_s13 = sphi %s1064_s13, %s1306_s13   ;;  %s1013_s12 = sphi %s1062_s12, %s1305_s12  }
   0x7   : > { %s28_s20 = sadd.s32 1, %s1029_s16  ;;  %s64_s21 = sadd.s32 1, %s1021_s14 }
   0x8   : > { %p29_p0 = scmp.ge.s32.totalorder %s28_s20, 30  ;;  %p71_p1 = scmp.ne.s32.totalorder %s1021_s14, %s1017_s13 }
   0x9   : > { %p72_p2 = scmp.eq.s32.totalorder %s1033_s17, 0  ;;  %p77_p3 = scmp.ne.s32.totalorder %s1017_s13, %s1013_s12 }
   0xa   : > { %s1311_s20 = smov (%p29_p0, %s28_s20), 0  ;;  %p78_p5 = scmp.eq.s32.totalorder %s792_s18, 0 }
   0xb   : > { %p73_p4 = por %p72_p2, %p71_p1  ;;  %s61_s22 = ssub.s32 %s1029_s16, %s1311_s20 }
   0xc   : > { %p129_p6 = scmp.eq.s32.totalorder %s792_s18, 29  ;;  %p62_p7 = scmp.eq.s32.totalorder %s61_s22, 0 }
   0xd   : > { %p1105_p8 = por %p78_p5, %p77_p3  ;;  %p135_p10 = scmp.eq.s32.totalorder %s793_s19, 29 }
   0xe   : > { %p1109_p9 = por %p129_p6, %p71_p1  ;;  %p796_p12 = scmp.ge.s32.totalorder %s1033_s17, 30 }
   0xf   : > { %s1114_s25 = scalar_select %p62_p7, %s1021_s14, %s64_s21  }
  0x10   : > { %p1116_p11 = por %p135_p10, %p77_p3  ;;  %160 = sbr.rel (%p796_p12) target bundleno = 58 (0x3a), region = 20 }
  0x12   : > { %s1303_s26 = scalar_select %p1116_p11, 1, 0 }
  0x17   : > { %163 = sbr.rel (!%p73_p4) target bundleno = 58 (0x3a), region = 24  ;;  %s164_s27 = sand.u32 (%p73_p4), 1, %s1021_s14  }
  0x18   : > { %s798_s28 = sshll.u32 (%p73_p4), %s1029_s16, 3  ;;  %s797_s29 = sshll.u32 (%p73_p4), %s164_s27, 7 }
  0x19   : > { %s170_s30 = ssub.s32 (%p73_p4), 239, %s798_s28  ;;  %s1129_s6 = scalar_lea.sflag (%p73_p4), [#allocation3], %s164_s27 }
  0x1a   : > { %p171_p13 = scmp.lt.s32.totalorder (%p73_p4), %s170_s30, 8  ;;  %s168_s7 = scalar_lea.vmem (%p73_p4), [#allocation2], %s797_s29 }
  0x1e   : > { %s1313_s30 = smov (!%p171_p13, %s170_s30), 8 }
  0x1f   : > { %s1126_s4 = sshll.u32 %s1313_s30, 8 }
  0x20   : > { %s175_s5 = ssub.s32 2048, %s1126_s4 }
  0x21   : > { %176 = vsyncadd %s1129_s6, %s175_s5  ;;  %p800_p0 = scmp.ne.s32.totalorder %s1126_s4, 0  ;;  %s848_s8 = sshll.u32 %s1029_s16, 9 }
  0x22   : > { %s1137_s11 = scalar_lea.hbm %s1298_s1, %s848_s8  ;;  %s802_s18 = sshll.u32 %s1313_s30, 2 }
  0x23   : > { %s182_s19 = sshll.u32 %s168_s7, 4  ;;  %s923_s21 = scalar_lea.hbm %s1137_s11, %s1126_s4  ;;  %s1140_s19 = int_to_ptr.vmem [resolvable:$true] %s182_s19 }
  0x24   : > { %p924_p1 = scmp.ne.s32.totalorder %s1137_s11, %s923_s21  ;;  %s927_s28 = scalar_lea.hbm %s1298_s1, 61184 }
  0x25   : > { %p928_p4 = scmp.lt.u32.totalorder %s1137_s11, %s1298_s1  ;;  %p929_p5 = scmp.lt.u32.totalorder %s927_s28, %s923_s21 }
  0x26   : > { %p925_p2 = pnand %p924_p1, %p800_p0  ;;  %p931_p7 = scmp.lt.u32.totalorder %s923_s21, %s1137_s11 }
  0x27   : > { %p930_p6 = por %p929_p5, %p928_p4 }
  0x28   : > { %p926_p3 = pneg %p925_p2 }
  0x29   : > { %p932_p10 = por %p931_p7, %p930_p6 }
  0x2b   : > { %p933_p12 = pnand %p932_p10, %p926_p3 }
  0x2d   : > { %936 = shalt.err (!%p933_p12)
}
  0x2e   : > { %s937_s7 = scalar_lea.vmem %s1140_s19, %s1126_s4  ;;  %s1035_s8 = smov [#allocation2]  }
  0x2f   : > { %p938_p13 = scmp.ne.s32.totalorder %s1140_s19, %s937_s7  ;;  %s941_s9 = sshll.u32 %s1035_s8, 4  ;;  %s942_s9 = int_to_ptr.vmem [resolvable:$false] %s941_s9 }
  0x30   : > { %s943_s10 = scalar_lea.vmem %s942_s9, 4096  ;;  %p944_p11 = scmp.lt.s32.totalorder %s1140_s19, %s942_s9 }
  0x31   : > { %p939_p1 = pnand %p938_p13, %p800_p0  ;;  %p945_p4 = scmp.lt.s32.totalorder %s943_s10, %s937_s7 }
  0x33   : > { %p940_p2 = pneg %p939_p1  ;;  %p946_p5 = por %p945_p4, %p944_p11 }
  0x35   : > { %p947_p6 = pnand %p946_p5, %p940_p2 }
  0x37   : > { %950 = shalt.err (!%p947_p6)
}
  0x38   : > { %s1036_s21 = smov 15296   ;;  %s1037_s22 = smov 512  }
  0x39   : > { %188 = dma.hbm_to_vmem [thread:$0]  (%p800_p0), %s1137_s11, %s1126_s4, %s1140_s19, %s1129_s6, %s1036_s21, %s1037_s22, %s802_s18  }
  0x3a PF: > { %p805_p3 = scmp.ge.s32.totalorder %s1033_s17, 1  ;;  %p206_p7 = scmp.lt.s32.totalorder %s1033_s17, 31 }
  0x3c   : > { %p207_p11 = pnand %p805_p3, %p206_p7 }
  0x3d   : > { %s1172_s27 = sand.u32 (!%p207_p11), 1, %s1017_s13  }
  0x3e   : > { %210 = sbr.rel (%p207_p11) target bundleno = 339 (0x153), region = 32  ;;  %s806_s28 = sshll.u32 (!%p207_p11), %s1172_s27, 7 }
  0x3f   : > { %s213_s29 = scalar_lea.sflag (!%p207_p11), [#allocation3], %s1172_s27  ;;  %s1176_s5 = scalar_lea.vmem (!%p207_p11), [#allocation2], %s806_s28 }
  0x45   : > { %1004 = dma.done.wait (%p1105_p8), %s213_s29, 2048  }
  0x46   : > { %1006 = vsyncadd (%p1105_p8), %s213_s29, 4294965248  ;;  %v1038_v0 = vmov 0   ;;  %v285_v1 = vld [vmem:[%s1176_s5] sm:$0xff]  ;;  %v286_v3 = vld [vmem:[%s1176_s5 + $0x8] sm:$0xff]  ;;  %vm428_vm0 = vcmask 261120   ;;  %s1206_s4 = sshll.u32 %s1025_s15, 3  ;;  %v303_v34 = vlaneseq }
  0x47   : > { %464 = vmatprep.mubr.bf16.mxu0 %v1038_v0  ;;  %507 = vmatprep.mubr.bf16.mxu1 %v1038_v0  ;;  %v289_v2 = vld [vmem:[%s1176_s5 + $0x20] sm:$0xff]  ;;  %v290_v5 = vld [vmem:[%s1176_s5 + $0x28] sm:$0xff]  ;;  %v287_v15 = vld [vmem:[%s1176_s5 + $0x10] sm:$0xff]  ;;  %p268_p8 = scmp.lt.s32.totalorder %s1206_s4, 238  ;;  %s807_s7 = sshll.u32 %s1172_s27, 6 }
  0x48   : > { %v811_v4 = vcombine.high %v285_v1, %v289_v2  ;;  %v810_v6 = vcombine.low %v285_v1, %v289_v2  ;;  %v293_v7 = vld [vmem:[%s1176_s5 + $0x40] sm:$0xff]  ;;  %v813_v9 = vcombine.high %v286_v3, %v290_v5  ;;  %v812_v10 = vcombine.low %v286_v3, %v290_v5  ;;  %v294_v12 = vld [vmem:[%s1176_s5 + $0x48] sm:$0xff]  ;;  %v291_v17 = vld [vmem:[%s1176_s5 + $0x30] sm:$0xff]  ;;  %s1214_s8 = scalar_lea.vmem [#allocation5], %s807_s7  ;;  %s661_s9 = scalar_lea.sflag [#allocation4], %s1172_s27 }
  0x49   : > { %v297_v8 = vld [vmem:[%s1176_s5 + $0x60] sm:$0xff]  ;;  %v298_v13 = vld [vmem:[%s1176_s5 + $0x68] sm:$0xff]  ;;  %v288_v18 = vld [vmem:[%s1176_s5 + $0x18] sm:$0xff]  ;;  %v815_v21 = vcombine.high %v287_v15, %v291_v17  ;;  %v814_v28 = vcombine.low %v287_v15, %v291_v17  ;;  %s269_s6 = scalar_select %p268_p8, %s1206_s4, 238  ;;  %v304_v35 = vshrl.u32 %v303_v34, 7 }
  0x4a   : > { %v819_v11 = vcombine.high %v293_v7, %v297_v8  ;;  %432 = vmatprep.subr.bf16.mxu0 %v811_v4  ;;  %v821_v14 = vcombine.high %v294_v12, %v298_v13  ;;  %475 = vmatprep.subr.bf16.mxu1 %v813_v9  ;;  %v818_v16 = vcombine.low %v293_v7, %v297_v8  ;;  %v292_v19 = vld [vmem:[%s1176_s5 + $0x38] sm:$0xff]  ;;  %v295_v23 = vld [vmem:[%s1176_s5 + $0x50] sm:$0xff]  ;;  %v922_v25 = vld [vmem:[%s1297_s0] sm:$0xff]   ;;  %s670_s10 = ssub.s32 (%p1109_p9), 239, %s1206_s4 }
  0x4b   : > { %433 = vmatpush1.bf16.msra.mxu0 %v810_v6  ;;  %476 = vmatpush1.bf16.msra.mxu1 %v812_v10  ;;  %v820_v20 = vcombine.low %v294_v12, %v298_v13  ;;  %v817_v22 = vcombine.high %v288_v18, %v292_v19  ;;  %v299_v24 = vld [vmem:[%s1176_s5 + $0x70] sm:$0xff]  ;;  %v296_v26 = vld [vmem:[%s1176_s5 + $0x58] sm:$0xff]  ;;  %v816_v29 = vcombine.low %v288_v18, %v292_v19  ;;  %s270_s19 = scalar_lea.vmem %s1299_s2, %s269_s6  ;;  %v305_v36 = vsub.s32 0, %v304_v35  ;;  %p671_p0 = scmp.lt.s32.totalorder (%p1109_p9), %s670_s10, 8 }
  0x4c   : > { %434 = vmatprep.subr.bf16.mxu0 %v819_v11  ;;  %477 = vmatprep.subr.bf16.mxu1 %v821_v14  ;;  %v300_v27 = vld [vmem:[%s1176_s5 + $0x78] sm:$0xff]  ;;  %v823_v30 = vcombine.high %v295_v23, %v299_v24  ;;  %v822_v32 = vcombine.low %v295_v23, %v299_v24  ;;  %v301_v37 = vld [vmem:[%s270_s19] sm:$0xff]  ;;  %v313_v38 = vsub.s32 2, %v304_v35  ;;  %v309_v39 = vsub.s32 1, %v304_v35 }
  0x4d   : > { %v825_v31 = vcombine.high %v296_v26, %v300_v27  ;;  %v824_v33 = vcombine.low %v296_v26, %v300_v27  ;;  %v317_v40 = vsub.s32 3, %v304_v35  ;;  %v306_v41 = vrot.slane %v301_v37, %v305_v36 }
  0x4e   : > { %v314_v42 = vrot.slane %v301_v37, %v313_v38  ;;  %v310_v43 = vrot.slane %v301_v37, %v309_v39  ;;  %v321_v49 = vsub.s32 4, %v304_v35  ;;  %v329_v54 = vsub.s32 6, %v304_v35 }
  0x4f   : > { %435 = vmatpush1.bf16.msra.mxu0 %v818_v16  ;;  %478 = vmatpush1.bf16.msra.mxu1 %v820_v20  ;;  %v318_v44 = vrot.slane %v301_v37, %v317_v40  ;;  %v325_v55 = vsub.s32 5, %v304_v35  ;;  %v333_v60 = vsub.s32 7, %v304_v35 }
  0x50   : > { %518 = vmatprep.subr.bf16.mxu0 %v815_v21  ;;  %561 = vmatprep.subr.bf16.mxu1 %v817_v22  ;;  %v322_v3 = vrot.slane %v301_v37, %v321_v49  ;;  %v330_v5 = vrot.slane %v301_v37, %v329_v54 }
  0x51   : > { %v326_v6 = vrot.slane %v301_v37, %v325_v55  ;;  %v334_v8 = vrot.slane %v301_v37, %v333_v60 }
  0x52   : > { %826 = vmatmul.mubr.msk.bf16.vlgmr.msra.gmra.mrb[0].mxu0 %vm428_vm0, %v922_v25  ;;  %827 = vmatmul.mubr.msk.bf16.vlgmr.msra.gmra.mrb[0].mxu1 %vm428_vm0, %v922_v25 }
  0x53   : > { %519 = vmatpush1.bf16.msra.mxu0 %v814_v28  ;;  %562 = vmatpush1.bf16.msra.mxu1 %v816_v29 }
  0x54   : > { %520 = vmatprep.subr.bf16.mxu0 %v823_v30  ;;  %563 = vmatprep.subr.bf16.mxu1 %v825_v31 }
  0x55   : > { %550 = vmatprep.mubr.bf16.mxu0 %v1038_v0  ;;  %593 = vmatprep.mubr.bf16.mxu1 %v1038_v0 }
  0x57   : > { %521 = vmatpush1.bf16.msra.mxu0 %v822_v32  ;;  %564 = vmatpush1.bf16.msra.mxu1 %v824_v33 }
  0x5a   : > { %828 = vmatmul.mubr.msk.bf16.vlgmr.msra.gmra.mrb[4].mxu0 %vm428_vm0, %v922_v25  ;;  %829 = vmatmul.mubr.msk.bf16.vlgmr.msra.gmra.mrb[4].mxu1 %vm428_vm0, %v922_v25 }
 0x125   : > { %v466_v45 = vpop.f32.mrb[0].mxu0  ;;  %v509_v47 = vpop.f32.mrb[0].mxu1 }
 0x126   : > { %v467_v46 = vadd.f32 %v466_v45, %v306_v41  ;;  %v468_v48 = vpop.f32.mrb[1].mxu0  ;;  %v510_v50 = vadd.f32 %v509_v47, %v314_v42  ;;  %v511_v52 = vpop.f32.mrb[1].mxu1 }
 0x127   : > { %v469_v51 = vadd.f32 %v468_v48, %v310_v43  ;;  %v470_v53 = vpop.f32.mrb[2].mxu0  ;;  %v512_v56 = vadd.f32 %v511_v52, %v318_v44  ;;  %v513_v58 = vpop.f32.mrb[2].mxu1 }
 0x128   : > { %v471_v57 = vadd.f32 %v470_v53, %v306_v41  ;;  %v472_v59 = vpop.f32.mrb[3].mxu0  ;;  %v514_v62 = vadd.f32 %v513_v58, %v314_v42  ;;  %v515_v0 = vpop.f32.mrb[3].mxu1 }
 0x129   : > { %v851_v61 = vpack.c.bf16 %v469_v51, %v467_v46  ;;  %v473_v63 = vadd.f32 %v472_v59, %v310_v43  ;;  %v852_v1 = vpack.c.bf16 %v512_v56, %v510_v50  ;;  %v516_v2 = vadd.f32 %v515_v0, %v318_v44 }
 0x12b   : > { %652 = vst [vmem:[%s1214_s8] sm:$0xff] %v851_v61  ;;  %v855_v4 = vpack.c.bf16 %v473_v63, %v471_v57  ;;  %653 = vst [vmem:[%s1214_s8 + $0x8] sm:$0xff] %v852_v1  ;;  %v856_v7 = vpack.c.bf16 %v516_v2, %v514_v62 }
 0x12d   : > { %656 = vst [vmem:[%s1214_s8 + $0x20] sm:$0xff] %v855_v4  ;;  %v552_v9 = vpop.f32.mrb[4].mxu0  ;;  %657 = vst [vmem:[%s1214_s8 + $0x28] sm:$0xff] %v856_v7  ;;  %v595_v11 = vpop.f32.mrb[4].mxu1 }
 0x12e   : > { %v553_v10 = vadd.f32 %v552_v9, %v322_v3  ;;  %v554_v12 = vpop.f32.mrb[5].mxu0  ;;  %v596_v13 = vadd.f32 %v595_v11, %v330_v5  ;;  %v597_v15 = vpop.f32.mrb[5].mxu1 }
 0x12f   : > { %v555_v14 = vadd.f32 %v554_v12, %v326_v6  ;;  %v556_v16 = vpop.f32.mrb[6].mxu0  ;;  %v598_v17 = vadd.f32 %v597_v15, %v334_v8  ;;  %v599_v19 = vpop.f32.mrb[6].mxu1  ;;  %667 = sbr.rel (!%p1109_p9) target bundleno = 339 (0x153), region = 40 }
 0x130   : > { %v557_v18 = vadd.f32 %v556_v16, %v322_v3  ;;  %v558_v20 = vpop.f32.mrb[7].mxu0  ;;  %v600_v22 = vadd.f32 %v599_v19, %v330_v5  ;;  %v601_v24 = vpop.f32.mrb[7].mxu1 }
 0x131   : > { %v853_v21 = vpack.c.bf16 %v555_v14, %v553_v10  ;;  %v559_v23 = vadd.f32 %v558_v20, %v326_v6  ;;  %v854_v25 = vpack.c.bf16 %v598_v17, %v596_v13  ;;  %v602_v26 = vadd.f32 %v601_v24, %v334_v8 }
 0x133   : > { %654 = vst [vmem:[%s1214_s8 + $0x10] sm:$0xff] %v853_v21  ;;  %v857_v27 = vpack.c.bf16 %v559_v23, %v557_v18  ;;  %655 = vst [vmem:[%s1214_s8 + $0x18] sm:$0xff] %v854_v25  ;;  %v858_v28 = vpack.c.bf16 %v602_v26, %v600_v22 }
 0x135   : > { %658 = vst [vmem:[%s1214_s8 + $0x30] sm:$0xff] %v857_v27  ;;  %659 = vst [vmem:[%s1214_s8 + $0x38] sm:$0xff] %v858_v28 }
 0x136   : > { %s1315_s10 = smov (!%p671_p0, %s670_s10), 8 }
 0x137   : > { %s1231_s21 = sshll.u32 %s1315_s10, 7 }
 0x138   : > { %s675_s22 = ssub.s32 1024, %s1231_s21 }
 0x139   : > { %676 = vsyncadd %s661_s9, %s675_s22  ;;  %p841_p9 = scmp.ne.s32.totalorder %s1231_s21, 0  ;;  %s859_s24 = sshll.u32 %s1025_s15, 9 }
 0x13a   : > { %s1241_s5 = scalar_lea.hbm %s1300_s3, %s859_s24  ;;  %s843_s23 = sshll.u32 %s1315_s10, 2 }
 0x13b   : > { %s684_s30 = sshll.u32 %s1214_s8, 4  ;;  %s1039_s6 = smov [#allocation5]   ;;  %s1245_s30 = int_to_ptr.vmem [resolvable:$true] %s684_s30 }
 0x13c   : > { %s951_s4 = scalar_lea.vmem %s1245_s30, %s1231_s21  ;;  %s955_s11 = sshll.u32 %s1039_s6, 4  ;;  %s956_s11 = int_to_ptr.vmem [resolvable:$false] %s955_s11 }
 0x13d   : > { %p952_p10 = scmp.ne.s32.totalorder %s1245_s30, %s951_s4  ;;  %s957_s15 = scalar_lea.vmem %s956_s11, 2048 }
 0x13e   : > { %p958_p1 = scmp.lt.s32.totalorder %s1245_s30, %s956_s11  ;;  %p959_p2 = scmp.lt.s32.totalorder %s957_s15, %s951_s4 }
 0x13f   : > { %p953_p12 = pnand %p952_p10, %p841_p9 }
 0x140   : > { %p960_p4 = por %p959_p2, %p958_p1 }
 0x141   : > { %p954_p13 = pneg %p953_p12 }
 0x143   : > { %p961_p5 = pnand %p960_p4, %p954_p13 }
 0x145   : > { %964 = shalt.err (!%p961_p5)
}
 0x146   : > { %s965_s18 = scalar_lea.hbm %s1241_s5, %s1231_s21  ;;  %s969_s8 = scalar_lea.hbm %s1300_s3, 30592 }
 0x147   : > { %p966_p6 = scmp.ne.s32.totalorder %s1241_s5, %s965_s18  ;;  %p970_p11 = scmp.lt.u32.totalorder %s1241_s5, %s1300_s3 }
 0x148   : > { %p971_p8 = scmp.lt.u32.totalorder %s969_s8, %s965_s18  ;;  %p973_p10 = scmp.lt.u32.totalorder %s965_s18, %s1241_s5 }
 0x149   : > { %p967_p3 = pnand %p966_p6, %p841_p9 }
 0x14a   : > { %p972_p0 = por %p971_p8, %p970_p11 }
 0x14b   : > { %p968_p7 = pneg %p967_p3 }
 0x14c   : > { %p974_p12 = por %p973_p10, %p972_p0 }
 0x14e   : > { %p975_p13 = pnand %p974_p12, %p968_p7 }
 0x150   : > { %978 = shalt.err (!%p975_p13)
}
 0x151   : > { %s1040_s28 = smov 512   ;;  %s1041_s29 = smov 15296  }
 0x152   : > { %690 = dma.vmem_to_hbm [thread:$0]  (%p841_p9), %s1245_s30, %s1231_s21, %s1241_s5, %s661_s9, %s1040_s28, %s1041_s29, %s843_s23  }
 0x153 PF: > { %p868_p1 = scmp.ge.s32.totalorder %s1033_s17, 2  ;;  %s699_s4 = sand.u32 1, %s1013_s12  }
 0x154   : > { %p1304_p2 = scmp.ne.s32.totalorder %s1303_s26, 0  ;;  %s700_s6 = scalar_lea.sflag [#allocation4], %s699_s4 }
 0x156   : > { %p865_p4 = pnand %p868_p1, %p1304_p2 }
 0x158   : > { %1008 = dma.done.wait (!%p865_p4), %s700_s6, 1024  }
 0x159   : > { %1010 = vsyncadd (!%p865_p4), %s700_s6, 4294966272  ;;  %s19_s17 = sadd.s32 1, %s1033_s17   ;;  %s1305_s12 = smov %s1017_s13 }
 0x15a   : > { %p16_p5 = scmp.ge.s32.totalorder %s19_s17, 32   ;;  %s1306_s13 = smov %s1021_s14 }
 0x15b   : > { %s1307_s14 = smov %s1114_s25  ;;  %s1308_s15 = smov %s1029_s16 }
 0x15c   : > { %s1309_s16 = smov %s1311_s20  ;;  %18 = sbr.rel (!%p16_p5) target bundleno = 6 (0x6), region = 83 }
 0x163   :  { %705 = vsyncpa [#allocation3], 1 }
 0x164   :  { %707 = vsyncpa [#allocation3 + $0x1], 1 }
 0x165   :  { %708 = vsyncpa [#allocation4], 1 }
 0x166   :  { %710 = vsyncpa [#allocation4 + $0x1], 1 }

</bundles_post_ra>
